<compile_context>
chip_gen: v6e
topology: v6e:2x2x1
jax: 0.10.0
libtpu: 0.0.40
codegen_flags: <defaults>
</compile_context>

<pallas_src>
import jax
import jax.numpy as jnp
from jax.experimental import pallas as pl
from jax.experimental.pallas import tpu as pltpu


# ----------------------------------------------------------------------------
# Pallas kernels: fused MLPD decoder forward for one (model, batch-tile) step.
# ----------------------------------------------------------------------------
def mlpd_kernel_cls(c_ref, x_ref, w1_ref, b1_ref, w2_ref, b2_ref, emb_ref, o_ref):
    # c_ref : (TB, 1)      int32   class ids for this batch tile
    # x_ref : (1, TB, Cin) bf16    backbone features
    # w1_ref: (1, Cin, Cout) bf16  spectral-normalized W1^T
    # b1_ref: (1, 1, Cout) f32
    # w2_ref: (1, 1, Cout) f32     spectral-normalized W2 row
    # b2_ref: (1, 1, 1)    f32
    # emb_ref:(1, K, Cout) bf16    class-embedding table
    # o_ref : (1, 1, 1, TB) f32    lane-dense output (batch on the lane axis)
    h = jnp.dot(x_ref[0], w1_ref[0], preferred_element_type=jnp.float32)
    h = h + b1_ref[0]                        # (TB, Cout)
    h = jnp.maximum(h, 0.2 * h)              # LeakyReLU(0.2)

    # In-kernel embedding gather: one_hot(c, K) @ embed  (MXU, K tiny).
    # one_hot is exact {0,1} bf16, so the f32-accumulated matmul reproduces the
    # bf16 embedding rows exactly.
    tb = h.shape[0]
    K = emb_ref.shape[1]
    onehot = (c_ref[...] ==
              jax.lax.broadcasted_iota(jnp.int32, (tb, K), 1)).astype(jnp.bfloat16)
    e = jnp.dot(onehot, emb_ref[0], preferred_element_type=jnp.float32)  # (TB, Cout)
    e = e + w2_ref[0]                        # fold the W2 row into the projection

    # Fused "out" Linear + projection:  sum(h * (w2_row + embed(c)), -1) + b2
    acc = jnp.sum(h * e, axis=-1, keepdims=True) + b2_ref[0]   # (TB, 1)
    o_ref[0, 0] = acc.T                                        # (1, TB) lane-dense


def mlpd_kernel_nocls(x_ref, w1_ref, b1_ref, w2_ref, b2_ref, o_ref):
    # Same as above, num_classes == 0 (no per-sample embedding input at all).
    h = jnp.dot(x_ref[0], w1_ref[0], preferred_element_type=jnp.float32)
    h = h + b1_ref[0]
    h = jnp.maximum(h, 0.2 * h)
    acc = jnp.sum(h * w2_ref[0], axis=-1, keepdims=True) + b2_ref[0]
    o_ref[0, 0] = acc.T


def _pick_batch_tile(B, max_tile=512, num_models=1):
    """Largest sensible batch tile (lane-dense, low step count)."""
    if B <= max_tile:
        # v7x megacore: with a single model give the grid >= 2 "parallel"
        # steps, but only when both halves stay lane-dense (>= 128, x128).
        if num_models == 1 and B % 256 == 0:
            return B // 2
        return B                      # whole batch in one step
    # Largest multiple-of-128 divisor of B that fits max_tile.
    for t in range(max_tile - max_tile % 128, 127, -128):
        if B % t == 0:
            return t
    # Fallback for awkward batch sizes: largest divisor <= max_tile.
    for t in range(max_tile, 0, -1):
        if B % t == 0:
            return t
    return B


def mlpd_forward_pallas(x, w1, b1, w2row, b2, embed=None, c=None,
                        *, max_batch_tile=512):
    """x: (M, B, Cin) bf16; w1: (M, Cin, Cout) bf16; b1/w2row: (M, 1, Cout) f32;
    b2: (M, 1, 1) f32; embed: (M, K, Cout) bf16 or None; c: (B, 1) int32 or None.
    Returns (M, B) f32 (b2 and the class projection term included)."""
    M, B, cin = x.shape
    cout = w1.shape[-1]
    bt = _pick_batch_tile(B, max_batch_tile, num_models=M)
    nbt = B // bt

    base_specs = [
        pl.BlockSpec((1, bt, cin), lambda m, i: (m, i, 0)),    # x (batch tiled)
        pl.BlockSpec((1, cin, cout), lambda m, i: (m, 0, 0)),  # w1 (per model)
        pl.BlockSpec((1, 1, cout), lambda m, i: (m, 0, 0)),    # b1
        pl.BlockSpec((1, 1, cout), lambda m, i: (m, 0, 0)),    # w2 row
        pl.BlockSpec((1, 1, 1), lambda m, i: (m, 0, 0)),       # b2
    ]

    if embed is not None:
        K = embed.shape[1]
        kernel = mlpd_kernel_cls
        in_specs = ([pl.BlockSpec((bt, 1), lambda m, i: (i, 0))]       # c
                    + base_specs
                    + [pl.BlockSpec((1, K, cout), lambda m, i: (m, 0, 0))])  # embed
        args = (c, x, w1, b1, w2row, b2, embed)
    else:
        kernel = mlpd_kernel_nocls
        in_specs = base_specs
        args = (x, w1, b1, w2row, b2)

    out = pl.pallas_call(
        kernel,
        out_shape=jax.ShapeDtypeStruct((M, nbt, 1, bt), jnp.float32),
        grid_spec=pltpu.PrefetchScalarGridSpec(
            num_scalar_prefetch=0,
            grid=(M, nbt),          # batch innermost -> W1 DMA'd once per model
            in_specs=in_specs,
            out_specs=pl.BlockSpec((1, 1, 1, bt), lambda m, i: (m, i, 0, 0)),
        ),
        compiler_params=pltpu.CompilerParams(
            dimension_semantics=("parallel", "parallel"),
            vmem_limit_bytes=64 * 1024 * 1024,
        ),
    )(*args)
    return out.reshape(M, B)


# ----------------------------------------------------------------------------
# Parameter setup glue (plain JAX): deterministic init + spectral normalization
# (spectral_norm is a weight reparameterization -> done outside the kernel).
# ----------------------------------------------------------------------------
def _linear_init(key, out_features, in_features):
    # Mimics torch.nn.Linear default init: U(-1/sqrt(fan_in), 1/sqrt(fan_in)).
    kw, kb = jax.random.split(key)
    bound = 1.0 / jnp.sqrt(in_features)
    w = jax.random.uniform(kw, (out_features, in_features), jnp.float32,
                           -bound, bound)
    b = jax.random.uniform(kb, (out_features,), jnp.float32, -bound, bound)
    return w, b


def _spectral_normalize(key, w, n_iter=5, eps=1e-12):
    # Power-iteration estimate of the top singular value (torch spectral_norm).
    u = jax.random.normal(key, (w.shape[0],), jnp.float32)
    u = u / (jnp.linalg.norm(u) + eps)
    v = None
    for _ in range(n_iter):
        v = w.T @ u
        v = v / (jnp.linalg.norm(v) + eps)
        u = w @ v
        u = u / (jnp.linalg.norm(u) + eps)
    sigma = u @ (w @ v)
    return w / sigma


class DiscriminatorPallas:
    """Pallas equivalent of Discriminator(cv_type=..., num_classes=K).

    Only the trainable MLPD decoder heads are implemented; the frozen
    CVBackbone feature extractor is assumed to have produced `cv_feat`.
    All heads run in ONE pallas_call with grid=(num_models, num_batch_tiles)
    (assumes every head shares in_ch/out_ch, true for a single cv_type)."""

    def __init__(self, key, num_models=1, in_ch=768, out_ch=256, num_classes=0):
        self.num_models = num_models
        self.num_classes = num_classes
        self.out_ch = out_ch

        w1s, b1s, w2rows, b2s, embeds = [], [], [], [], []
        for _ in range(num_models):
            k1, k2, k3, k4, k5, key = jax.random.split(key, 6)
            w1, b1 = _linear_init(k1, out_ch, in_ch)    # w1: (Cout, Cin)
            w2, b2 = _linear_init(k2, 1, out_ch)        # w2: (1, Cout)
            w1 = _spectral_normalize(k3, w1)
            w2 = _spectral_normalize(k4, w2)
            w1s.append(w1.T)                            # (Cin, Cout)
            b1s.append(b1.reshape(1, out_ch))           # (1, Cout)
            w2rows.append(w2.reshape(1, out_ch))        # (1, Cout)
            b2s.append(b2.reshape(1, 1))                # (1, 1)
            if num_classes > 0:
                embeds.append(jax.random.normal(k5, (num_classes, out_ch),
                                                jnp.float32))

        # Stacked per-model parameters.
        self.w1 = jnp.stack(w1s).astype(jnp.bfloat16)   # (M, Cin, Cout) bf16
        self.b1 = jnp.stack(b1s)                        # (M, 1, Cout)   f32
        self.w2row = jnp.stack(w2rows)                  # (M, 1, Cout)   f32
        self.b2 = jnp.stack(b2s).reshape(num_models, 1, 1)   # (M, 1, 1)  f32
        self.embed = (jnp.stack(embeds).astype(jnp.bfloat16)  # (M, K, Cout) bf16
                      if num_classes > 0 else None)

    def __call__(self, cv_feat, c=None):
        # cv_feat: list (len == num_models) of (B, Cin) feature arrays.
        # Cast straight to bf16 (no f32 stack round-trip in HBM).
        x = jnp.stack([jnp.asarray(f).astype(jnp.bfloat16) for f in cv_feat],
                      axis=0)                            # (M, B, Cin) bf16
        B = x.shape[1]
        if self.embed is not None:
            if c is None:
                raise ValueError("class labels `c` are required when "
                                 "num_classes > 0 (matches the PyTorch module)")
            c2 = jnp.asarray(c, jnp.int32).reshape(B, 1)
            out = mlpd_forward_pallas(x, self.w1, self.b1, self.w2row, self.b2,
                                      embed=self.embed, c=c2)
        else:
            out = mlpd_forward_pallas(x, self.w1, self.b1, self.w2row, self.b2)
        return [out[m].reshape(B, 1) for m in range(self.num_models)]


# Plain-JAX reference for a correctness sanity check (matched bf16 inputs).
def _mlpd_reference(x_bf16, w1_bf16, b1, w2row, b2, e_f32):
    x = x_bf16.astype(jnp.float32)
    w1 = w1_bf16.astype(jnp.float32)
    h = x @ w1 + b1
    h = jnp.maximum(h, 0.2 * h)
    out = h @ w2row.T + b2
    if e_f32 is not None:
        out = out + jnp.sum(e_f32 * h, axis=1, keepdims=True)
    return out


if __name__ == "__main__":
    key = jax.random.PRNGKey(0)
    k_model, k_model2, k_feat, k_cls = jax.random.split(key, 4)

    B, IN_CH, OUT_CH, NUM_CLASSES, NUM_MODELS = 16, 768, 256, 10, 2

    # --- conditional case (num_classes > 0), two backbone heads ---------------
    disc = DiscriminatorPallas(k_model, num_models=NUM_MODELS, in_ch=IN_CH,
                               out_ch=OUT_CH, num_classes=NUM_CLASSES)

    # Synthetic CV-backbone features (the CVBackbone itself is out of scope).
    feat_keys = jax.random.split(k_feat, NUM_MODELS)
    cv_feat = [jax.random.normal(fk, (B, IN_CH), jnp.float32)
               for fk in feat_keys]
    c = jax.random.randint(k_cls, (B,), 0, NUM_CLASSES)

    pred_mask = disc(cv_feat, c)
    pred_mask = [jax.block_until_ready(p) for p in pred_mask]

    max_err = 0.0
    for m in range(NUM_MODELS):
        e_m = disc.embed[m][c].astype(jnp.float32)
        ref = _mlpd_reference(cv_feat[m].astype(jnp.bfloat16), disc.w1[m],
                              disc.b1[m], disc.w2row[m], disc.b2[m, 0], e_m)
        assert pred_mask[m].shape == (B, 1)
        max_err = max(max_err, float(jnp.max(jnp.abs(pred_mask[m] - ref))))
    assert max_err < 2e-3, f"conditional: max abs error {max_err}"

    # --- unconditional case (num_classes == 0), single head -------------------
    disc0 = DiscriminatorPallas(k_model2, num_models=1, in_ch=IN_CH,
                                out_ch=OUT_CH, num_classes=0)
    pred0 = disc0([cv_feat[0]])
    pred0 = [jax.block_until_ready(p) for p in pred0]
    ref0 = _mlpd_reference(cv_feat[0].astype(jnp.bfloat16), disc0.w1[0],
                           disc0.b1[0], disc0.w2row[0], disc0.b2[0, 0], None)
    assert pred0[0].shape == (B, 1)
    err0 = float(jnp.max(jnp.abs(pred0[0] - ref0)))
    assert err0 < 2e-3, f"unconditional: max abs error {err0}"

    print("KERNEL_OK")
</pallas_src>

<mosaic_0001>
module attributes {stable_mosaic.version = 11 : i64} {
  func.func @mlpd_kernel_cls(%arg0: i32, %arg1: i32, %arg2: memref<16x1xi32, #tpu.memory_space<vmem>>, %arg3: memref<1x16x768xbf16, #tpu.memory_space<vmem>>, %arg4: memref<1x768x256xbf16, #tpu.memory_space<vmem>>, %arg5: memref<1x1x256xf32, #tpu.memory_space<vmem>>, %arg6: memref<1x1x256xf32, #tpu.memory_space<vmem>>, %arg7: memref<1x1x1xf32, #tpu.memory_space<vmem>>, %arg8: memref<1x10x256xbf16, #tpu.memory_space<vmem>>, %arg9: memref<1x1x1x16xf32, #tpu.memory_space<vmem>>) attributes {dimension_semantics = [#tpu.dimension_semantics<parallel>, #tpu.dimension_semantics<parallel>], iteration_bounds = array<i64: 2, 1>, scalar_prefetch = 0 : i64, scratch_operands = 0 : i64, tpu.core_type = #tpu.core_type<tc>, window_params = [{transform_indices = @transform_0, window_bounds = array<i64: 16, 1>}, {transform_indices = @transform_1, window_bounds = array<i64: 1, 16, 768>}, {transform_indices = @transform_2, window_bounds = array<i64: 1, 768, 256>}, {transform_indices = @transform_3, window_bounds = array<i64: 1, 1, 256>}, {transform_indices = @transform_4, window_bounds = array<i64: 1, 1, 256>}, {transform_indices = @transform_5, window_bounds = array<i64: 1, 1, 1>}, {transform_indices = @transform_6, window_bounds = array<i64: 1, 10, 256>}, {transform_indices = @transform_7, window_bounds = array<i64: 1, 1, 1, 16>}]} {
    %c0 = arith.constant 0 : index
    %c0_0 = arith.constant 0 : index
    %c0_1 = arith.constant 0 : index
    %0 = vector.load %arg3[%c0, %c0_0, %c0_1] : memref<1x16x768xbf16, #tpu.memory_space<vmem>>, vector<1x16x768xbf16>
    %1 = vector.shape_cast %0 : vector<1x16x768xbf16> to vector<16x768xbf16>
    %c0_2 = arith.constant 0 : index
    %c0_3 = arith.constant 0 : index
    %c0_4 = arith.constant 0 : index
    %2 = vector.load %arg4[%c0_2, %c0_3, %c0_4] : memref<1x768x256xbf16, #tpu.memory_space<vmem>>, vector<1x768x256xbf16>
    %3 = vector.shape_cast %2 : vector<1x768x256xbf16> to vector<768x256xbf16>
    %cst = arith.constant dense<0.000000e+00> : vector<16x256xf32>
    %4 = tpu.matmul %1, %3, %cst {dimension_numbers = #tpu.dot_dimension_numbers<[1], [0], [0], [1], [0, 0, 1, 1], [], []>} : vector<16x768xbf16>, vector<768x256xbf16>, vector<16x256xf32> -> vector<16x256xf32>
    %c0_5 = arith.constant 0 : index
    %c0_6 = arith.constant 0 : index
    %c0_7 = arith.constant 0 : index
    %5 = vector.load %arg5[%c0_5, %c0_6, %c0_7] : memref<1x1x256xf32, #tpu.memory_space<vmem>>, vector<1x1x256xf32>
    %6 = vector.shape_cast %5 : vector<1x1x256xf32> to vector<1x256xf32>
    %7 = vector.broadcast %6 : vector<1x256xf32> to vector<16x256xf32>
    %8 = arith.addf %4, %7 : vector<16x256xf32>
    %cst_8 = arith.constant 2.000000e-01 : f32
    %9 = vector.broadcast %cst_8 : f32 to vector<16x256xf32>
    %10 = arith.mulf %9, %8 : vector<16x256xf32>
    %11 = arith.maximumf %8, %10 : vector<16x256xf32>
    %c0_9 = arith.constant 0 : index
    %c0_10 = arith.constant 0 : index
    %12 = vector.load %arg2[%c0_9, %c0_10] : memref<16x1xi32, #tpu.memory_space<vmem>>, vector<16x1xi32>
    %13 = tpu.iota {dimensions = array<i32: 1>} : vector<16x10xi32>
    %14 = vector.broadcast %12 : vector<16x1xi32> to vector<16x10xi32>
    %15 = arith.cmpi eq, %14, %13 : vector<16x10xi32>
    %16 = arith.extui %15 : vector<16x10xi1> to vector<16x10xi32>
    %17 = arith.sitofp %16 : vector<16x10xi32> to vector<16x10xf32>
    %18 = arith.truncf %17 : vector<16x10xf32> to vector<16x10xbf16>
    %c0_11 = arith.constant 0 : index
    %c0_12 = arith.constant 0 : index
    %c0_13 = arith.constant 0 : index
    %19 = vector.load %arg8[%c0_11, %c0_12, %c0_13] : memref<1x10x256xbf16, #tpu.memory_space<vmem>>, vector<1x10x256xbf16>
    %20 = vector.shape_cast %19 : vector<1x10x256xbf16> to vector<10x256xbf16>
    %cst_14 = arith.constant dense<0.000000e+00> : vector<16x256xf32>
    %21 = tpu.matmul %18, %20, %cst_14 {dimension_numbers = #tpu.dot_dimension_numbers<[1], [0], [0], [1], [0, 0, 1, 1], [], []>} : vector<16x10xbf16>, vector<10x256xbf16>, vector<16x256xf32> -> vector<16x256xf32>
    %c0_15 = arith.constant 0 : index
    %c0_16 = arith.constant 0 : index
    %c0_17 = arith.constant 0 : index
    %22 = vector.load %arg6[%c0_15, %c0_16, %c0_17] : memref<1x1x256xf32, #tpu.memory_space<vmem>>, vector<1x1x256xf32>
    %23 = vector.shape_cast %22 : vector<1x1x256xf32> to vector<1x256xf32>
    %24 = vector.broadcast %23 : vector<1x256xf32> to vector<16x256xf32>
    %25 = arith.addf %21, %24 : vector<16x256xf32>
    %26 = arith.mulf %11, %25 : vector<16x256xf32>
    %cst_18 = arith.constant dense<0.000000e+00> : vector<16xf32>
    %27 = vector.multi_reduction <add>, %26, %cst_18 [1] : vector<16x256xf32> to vector<16xf32>
    %28 = vector.shape_cast %27 : vector<16xf32> to vector<16x1xf32>
    %c0_19 = arith.constant 0 : index
    %c0_20 = arith.constant 0 : index
    %c0_21 = arith.constant 0 : index
    %29 = vector.load %arg7[%c0_19, %c0_20, %c0_21] : memref<1x1x1xf32, #tpu.memory_space<vmem>>, vector<1x1x1xf32>
    %30 = vector.shape_cast %29 : vector<1x1x1xf32> to vector<1x1xf32>
    %31 = vector.broadcast %30 : vector<1x1xf32> to vector<16x1xf32>
    %32 = arith.addf %28, %31 : vector<16x1xf32>
    %33 = tpu.transpose %32, [1, 0] : vector<16x1xf32> -> vector<1x16xf32>
    %c0_22 = arith.constant 0 : index
    %c0_23 = arith.constant 0 : index
    %c0_24 = arith.constant 0 : index
    %c0_25 = arith.constant 0 : index
    %34 = vector.load %arg9[%c0_22, %c0_23, %c0_24, %c0_25] : memref<1x1x1x16xf32, #tpu.memory_space<vmem>>, vector<1x1x1x16xf32>
    %35 = vector.shape_cast %34 : vector<1x1x1x16xf32> to vector<1x16xf32>
    %36 = vector.shape_cast %33 : vector<1x16xf32> to vector<1x1x1x16xf32>
    tpu.vector_store %arg9[%c0_22, %c0_23, %c0_24, %c0_25], %36 {strides = array<i32>} : memref<1x1x1x16xf32, #tpu.memory_space<vmem>>, vector<1x1x1x16xf32>,
    return
  }
  func.func @transform_0(%arg0: i32, %arg1: i32) -> (i32, i32) {
    %c0_i32 = arith.constant 0 : i32
    %c0_i32_0 = arith.constant 0 : i32
    return %arg1, %c0_i32 : i32, i32
  }
  func.func @transform_1(%arg0: i32, %arg1: i32) -> (i32, i32, i32) {
    %c0_i32 = arith.constant 0 : i32
    %c0_i32_0 = arith.constant 0 : i32
    return %arg0, %arg1, %c0_i32 : i32, i32, i32
  }
  func.func @transform_2(%arg0: i32, %arg1: i32) -> (i32, i32, i32) {
    %c0_i32 = arith.constant 0 : i32
    %c0_i32_0 = arith.constant 0 : i32
    %c0_i32_1 = arith.constant 0 : i32
    return %arg0, %c0_i32, %c0_i32_0 : i32, i32, i32
  }
  func.func @transform_3(%arg0: i32, %arg1: i32) -> (i32, i32, i32) {
    %c0_i32 = arith.constant 0 : i32
    %c0_i32_0 = arith.constant 0 : i32
    %c0_i32_1 = arith.constant 0 : i32
    return %arg0, %c0_i32, %c0_i32_0 : i32, i32, i32
  }
  func.func @transform_4(%arg0: i32, %arg1: i32) -> (i32, i32, i32) {
    %c0_i32 = arith.constant 0 : i32
    %c0_i32_0 = arith.constant 0 : i32
    %c0_i32_1 = arith.constant 0 : i32
    return %arg0, %c0_i32, %c0_i32_0 : i32, i32, i32
  }
  func.func @transform_5(%arg0: i32, %arg1: i32) -> (i32, i32, i32) {
    %c0_i32 = arith.constant 0 : i32
    %c0_i32_0 = arith.constant 0 : i32
    %c0_i32_1 = arith.constant 0 : i32
    return %arg0, %c0_i32, %c0_i32_0 : i32, i32, i32
  }
  func.func @transform_6(%arg0: i32, %arg1: i32) -> (i32, i32, i32) {
    %c0_i32 = arith.constant 0 : i32
    %c0_i32_0 = arith.constant 0 : i32
    %c0_i32_1 = arith.constant 0 : i32
    return %arg0, %c0_i32, %c0_i32_0 : i32, i32, i32
  }
  func.func @transform_7(%arg0: i32, %arg1: i32) -> (i32, i32, i32, i32) {
    %c0_i32 = arith.constant 0 : i32
    %c0_i32_0 = arith.constant 0 : i32
    %c0_i32_1 = arith.constant 0 : i32
    return %arg0, %arg1, %c0_i32, %c0_i32_0 : i32, i32, i32, i32
  }
}

</mosaic_0001>

<bundles_post_ra>
// kernel: tpu_custom_call.1
= control target key start
LH: loop header
LB: loop body
LE: loop exit
PB: predicated region body
PF: predicated region fallthrough
CT: control target
= control target key end

     0   :  { %s2383_s0 = inlined_call_operand.vmem [shape: s32[16,1], index: 0, kind: input, shape index: {}]   ;;  %s2384_s1 = inlined_call_operand.hbm [shape: bf16[2,16,768], index: 1, kind: input, shape index: {}]   ;;  %s2385_s2 = inlined_call_operand.hbm [shape: bf16[2,768,256], index: 2, kind: input, shape index: {}]   ;;  %s2386_s3 = inlined_call_operand.vmem [shape: f32[2,1,256], index: 3, kind: input, shape index: {}]   ;;  %s2387_s4 = inlined_call_operand.vmem [shape: f32[2,1,256], index: 4, kind: input, shape index: {}]   ;;  %s2388_s5 = inlined_call_operand.vmem [shape: f32[2,1,1], index: 5, kind: input, shape index: {}]   ;;  %s2389_s6 = inlined_call_operand.vmem [shape: bf16[2,10,256], index: 6, kind: input, shape index: {}]   ;;  %s2390_s7 = inlined_call_operand.hbm [shape: f32[2,1,1,16], index: 7, kind: output, shape index: {}]  }
   0x1   :  { %2394 = sst [smem:[#allocation15_spill]] %s2384_s1 }
   0x2   :  { %12 = vsyncpa [#allocation3], 0 }
   0x3   :  { %14 = vsyncpa [#allocation3 + $0x1], 0 }
   0x4   :  { %15 = vsyncpa [#allocation6], 0 }
   0x5   :  { %17 = vsyncpa [#allocation6 + $0x1], 0 }
   0x6   :  { %18 = vsyncpa [#allocation4], 0 }
   0x7   :  { %20 = vsyncpa [#allocation4 + $0x1], 0  ;;  %s2081_s24 = smov 0   ;;  %s2083_s25 = smov 0  }
   0x8   :  { %s2085_s26 = smov 0   ;;  %s2087_s27 = smov 0  }
   0x9   :  { %s2089_s28 = smov 0   ;;  %s2091_s29 = smov 0  }
   0xa LB: > { %2395 = sst [smem:[#allocation11_spill]] %s2018_s26  ;;  %s1529_s30 = sadd.s32 4294967295, %s2030_s29   ;;  %s2030_s29 = sphi %s2091_s29, %s26_s29   ;;  %s2026_s28 = sphi %s2089_s28, %s2413_s28   ;;  %s2022_s27 = sphi %s2087_s27, %s2412_s27   ;;  %s2018_s26 = sphi %s2085_s26, %s2408_s26   ;;  %s2014_s25 = sphi %s2083_s25, %s2411_s25   ;;  %s2010_s24 = sphi %s2081_s24, %s2410_s24  }
   0xb   : > { %s1530_s8 = sadd.s32 4294967294, %s2030_s29   ;;  %s38_s9 = sadd.s32 1, %s2026_s28 }
   0xc   : > { %s73_s10 = sadd.s32 1, %s2018_s26  ;;  %p40_p0 = scmp.ge.s32.totalorder %s38_s9, 2 }
   0xd   : > { %p80_p1 = scmp.ne.s32.totalorder %s2018_s26, %s2014_s25  ;;  %p81_p2 = scmp.eq.s32.totalorder %s2030_s29, 0 }
   0xe   : > { %p86_p3 = scmp.ne.s32.totalorder %s2014_s25, %s2010_s24  ;;  %s2415_s9 = smov (%p40_p0, %s38_s9), 0 }
   0xf   : > { %2396 = sst [smem:[#allocation12_spill]] %s2415_s9  ;;  %p2122_p4 = por %p81_p2, %p80_p1 }
  0x10   : > { %p87_p5 = scmp.eq.s32.totalorder %s1529_s30, 0  ;;  %s68_s12 = ssub.s32 %s2026_s28, %s2415_s9 }
  0x11   : > { %p242_p6 = scmp.eq.s32.totalorder %s1529_s30, 1  ;;  %p71_p7 = scmp.eq.s32.totalorder %s68_s12, 0 }
  0x12   : > { %p2128_p8 = por %p87_p5, %p86_p3  ;;  %p248_p10 = scmp.eq.s32.totalorder %s1530_s8, 1 }
  0x13   : > { %p2132_p9 = por %p242_p6, %p80_p1  ;;  %p1533_p12 = scmp.ge.s32.totalorder %s2030_s29, 2 }
  0x14   : > { %s2137_s15 = scalar_select %p71_p7, %s2018_s26, %s73_s10  }
  0x15   : > { %p2139_p11 = por %p248_p10, %p86_p3  ;;  %p1677_p13 = scmp.lt.s32.totalorder %s2030_s29, 2 }
  0x16   : > { %2400 = sst [smem:[#allocation13_spill]] %s2137_s15  ;;  %s2146_s17 = sand.u32 1, %s2018_s26  }
  0x17   : > { %s2401_s16 = scalar_select %p2139_p11, 1, 0 }
  0x18   : > { %s1654_s18 = smul.u32 48, %s2146_s17  ;;  %p2152_p0 = pnand %p1677_p13, %p2122_p4 }
  0x19   : > { %2402 = sst [smem:[#allocation14_spill]] %s2401_s16  ;;  %s1655_s19 = smul.u32 768, %s2026_s28 }
  0x1a   : > { %s2404_s1 = sld [smem:[#allocation15_spill]]  ;;  %s281_s30 = scalar_lea.vmem [#allocation2], %s1654_s18 }
  0x1b   : > { %s291_s8 = sshll.u32 %s281_s30, 4  ;;  %p1536_p1 = scmp.ge.s32.totalorder %s2030_s29, 1  ;;  %s292_s8 = int_to_ptr.vmem [resolvable:$true] %s291_s8 }
  0x1c   : > { %s278_s10 = scalar_lea.sflag [#allocation3], %s2146_s17  ;;  %p1892_p2 = pneg %p2152_p0 }
  0x1d   : > { %s1903_s12 = scalar_lea.vmem %s292_s8, 768  ;;  %s2032_s11 = smov [#allocation2]  }
  0x1e   : > { %p1904_p3 = scmp.ne.s32.totalorder %s292_s8, %s1903_s12  ;;  %s1908_s9 = sshll.u32 %s2032_s11, 4  ;;  %s1909_s9 = int_to_ptr.vmem [resolvable:$false] %s1908_s9 }
  0x1f   : > { %s1910_s21 = scalar_lea.vmem %s1909_s9, 1536  ;;  %p1911_p6 = scmp.lt.s32.totalorder %s292_s8, %s1909_s9 }
  0x20   : > { %s290_s23 = scalar_lea.hbm %s2404_s1, %s1655_s19  ;;  %p1906_p4 = pnand %p1904_p3, %p1892_p2 }
  0x21   : > { %p1912_p7 = scmp.lt.s32.totalorder %s1910_s21, %s1903_s12 }
  0x22   : > { %p1907_p5 = pneg %p1906_p4 }
  0x23   : > { %p1913_p10 = por %p1912_p7, %p1911_p6 }
  0x25   : > { %p1914_p13 = pnand %p1913_p10, %p1907_p5 }
  0x27   : > { %1917 = shalt.err (!%p1914_p13)
}
  0x28   : > { %s2033_s18 = smov 384   ;;  %s2034_s19 = smov 24  }
  0x29   : > { %1669 = dma.hbm_to_vmem [thread:$0]  (!%p2152_p0), %s290_s23, 768, %s292_s8, %s278_s10, %s2033_s18, %s2033_s18, %s2034_s19  }
  0x2a   : > { %p348_p3 = scmp.lt.s32.totalorder %s2030_s29, 3  ;;  %s1656_s22 = smul.u32 768, %s2146_s17 }
  0x2b   : > { %s1657_s30 = smul.u32 12288, %s2026_s28  ;;  %s302_s26 = scalar_lea.sflag [#allocation6], %s2146_s17 }
  0x2c   : > { %p2172_p4 = pnand %p1536_p1, %p348_p3  ;;  %s305_s1 = scalar_lea.vmem [#allocation5], %s1656_s22 }
  0x2d   : > { %s311_s21 = scalar_lea.hbm %s2385_s2, %s1657_s30  ;;  %s312_s15 = sshll.u32 %s305_s1, 4  ;;  %s313_s15 = int_to_ptr.vmem [resolvable:$true] %s312_s15 }
  0x2e   : > { %s1931_s16 = scalar_lea.vmem %s313_s15, 12288  ;;  %s2035_s23 = smov [#allocation5]  }
  0x2f   : > { %p1932_p5 = scmp.ne.s32.totalorder %s313_s15, %s1931_s16  ;;  %s1936_s8 = sshll.u32 %s2035_s23, 4  ;;  %s1937_s8 = int_to_ptr.vmem [resolvable:$false] %s1936_s8 }
  0x30   : > { %s1938_s10 = scalar_lea.vmem %s1937_s8, 24576  ;;  %p1939_p1 = scmp.lt.s32.totalorder %s313_s15, %s1937_s8 }
  0x31   : > { %p1934_p6 = pnand %p1932_p5, %p1892_p2  ;;  %p1940_p10 = scmp.lt.s32.totalorder %s1938_s10, %s1931_s16 }
  0x33   : > { %p1935_p7 = pneg %p1934_p6  ;;  %p1941_p13 = por %p1940_p10, %p1939_p1 }
  0x35   : > { %p1942_p3 = pnand %p1941_p13, %p1935_p7 }
  0x37   : > { %1945 = shalt.err (!%p1942_p3)
}
  0x38   : > { %s2036_s18 = smov 128   ;;  %s2037_s1 = smov 8  }
  0x39   : > { %1672 = dma.hbm_to_vmem [thread:$0]  (!%p2152_p0), %s311_s21, 12288, %s313_s15, %s302_s26, %s2036_s18, %s2036_s18, %s2037_s1  }
  0x3a   : > { %352 = sbr.rel (%p2172_p4) target bundleno = 681 (0x2a9), region = 48  ;;  %s2189_s17 = sand.u32 (!%p2172_p4), 1, %s2014_s25  }
  0x3b   : > { %s1658_s19 = smul.u32 (!%p2172_p4), 48, %s2189_s17  ;;  %s355_s22 = scalar_lea.sflag (!%p2172_p4), [#allocation3], %s2189_s17 }
  0x3d   : > { %s2193_s16 = scalar_lea.vmem (!%p2172_p4), [#allocation2], %s1658_s19 }
  0x3f   : > { %1997 = dma.done.wait (%p2128_p8), %s355_s22, 768  }
  0x40   : > { %1999 = vsyncadd (%p2128_p8), %s355_s22, 4294966528  ;;  %s1659_s26 = smul.u32 768, %s2189_s17  ;;  %s364_s15 = scalar_lea.sflag [#allocation6], %s2189_s17 }
  0x42   : > { %s2201_s20 = scalar_lea.vmem [#allocation5], %s1659_s26 }
  0x43   : > { %2001 = dma.done.wait (%p2128_p8), %s364_s15, 12288  }
  0x44   : > { %2003 = vsyncadd (%p2128_p8), %s364_s15, 4294955008  ;;  %v2038_v0 = vmov 0   ;;  %v1208_v1 = vld [vmem:[%s2383_s0] sm:$0xff]  ;;  %v1734_v2 = vld [vmem:[%s2201_s20 + $0x74] ss:$8 sps:$4 sm:$0xff]   ;;  %p430_p8 = scmp.lt.s32.totalorder %s2022_s27, 1 }
  0x45   : > { %1733 = vset.pattern.permute.xlu0 %v2038_v0  ;;  %v1736_v3 = vld [vmem:[%s2201_s20 + $0x70] ss:$8 sps:$4 sm:$0xff]   ;;  %v1209_v4 = vld [vmem:[%s2383_s0 + $0x8] sm:$0xff]  ;;  %v1737_v5 = vld [vmem:[%s2201_s20 + $0x174] ss:$8 sps:$4 sm:$0xff]   ;;  %1071 = vmatprep.subr.bf16.mxu0 %v1734_v2  ;;  %vm1251_vm0 = vcmask 1044480  }
  0x46   : > { %1213 = vperm.xlu0 %1733, %v1208_v1   ;;  %v1739_v6 = vld [vmem:[%s2201_s20 + $0x170] ss:$8 sps:$4 sm:$0xff]   ;;  %1072 = vmatpush1.bf16.msra.mxu0 %v1736_v3  ;;  %v1740_v7 = vld [vmem:[%s2201_s20 + $0x64] ss:$8 sps:$4 sm:$0xff]   ;;  %v1742_v8 = vld [vmem:[%s2201_s20 + $0x60] ss:$8 sps:$4 sm:$0xff]  }
  0x47   : > { %1114 = vmatprep.subr.bf16.mxu1 %v1737_v5  ;;  %v1743_v9 = vld [vmem:[%s2201_s20 + $0x164] ss:$8 sps:$4 sm:$0xff]   ;;  %v1745_v10 = vld [vmem:[%s2201_s20 + $0x160] ss:$8 sps:$4 sm:$0xff]   ;;  %1073 = vmatprep.subr.bf16.mxu0 %v1740_v7  ;;  %v1746_v11 = vld [vmem:[%s2201_s20 + $0x54] ss:$8 sps:$4 sm:$0xff]  }
  0x48   : > { %1115 = vmatpush1.bf16.msra.mxu1 %v1739_v6  ;;  %v1748_v12 = vld [vmem:[%s2201_s20 + $0x50] ss:$8 sps:$4 sm:$0xff]   ;;  %v1749_v13 = vld [vmem:[%s2201_s20 + $0x154] ss:$8 sps:$4 sm:$0xff]   ;;  %v1752_v15 = vld [vmem:[%s2201_s20 + $0x44] ss:$8 sps:$4 sm:$0xff]  }
  0x49   : > { %1116 = vmatprep.subr.bf16.mxu1 %v1743_v9  ;;  %v1751_v14 = vld [vmem:[%s2201_s20 + $0x150] ss:$8 sps:$4 sm:$0xff]   ;;  %v1755_v16 = vld [vmem:[%s2201_s20 + $0x144] ss:$8 sps:$4 sm:$0xff]   ;;  %v1754_v17 = vld [vmem:[%s2201_s20 + $0x40] ss:$8 sps:$4 sm:$0xff]  }
  0x4a   : > { %1216 = vperm.xlu0 %1733, %v1209_v4   ;;  %1074 = vmatpush1.bf16.msra.mxu0 %v1742_v8  ;;  %v1757_v18 = vld [vmem:[%s2201_s20 + $0x140] ss:$8 sps:$4 sm:$0xff]   ;;  %v1758_v19 = vld [vmem:[%s2201_s20 + $0x34] ss:$8 sps:$4 sm:$0xff]   ;;  %v1760_v21 = vld [vmem:[%s2201_s20 + $0x30] ss:$8 sps:$4 sm:$0xff]  }
  0x4b   : > { %1075 = vmatprep.subr.bf16.mxu0 %v1746_v11  ;;  %v1761_v20 = vld [vmem:[%s2201_s20 + $0x134] ss:$8 sps:$4 sm:$0xff]   ;;  %v1763_v22 = vld [vmem:[%s2201_s20 + $0x130] ss:$8 sps:$4 sm:$0xff]   ;;  %v1764_v23 = vld [vmem:[%s2201_s20 + $0x24] ss:$8 sps:$4 sm:$0xff]  }
  0x4c   : > { %1117 = vmatpush1.bf16.msra.mxu1 %v1745_v10  ;;  %v1767_v24 = vld [vmem:[%s2201_s20 + $0x124] ss:$8 sps:$4 sm:$0xff]   ;;  %v1766_v25 = vld [vmem:[%s2201_s20 + $0x20] ss:$8 sps:$4 sm:$0xff]   ;;  %v1770_v27 = vld [vmem:[%s2201_s20 + $0x14] ss:$8 sps:$4 sm:$0xff]  }
  0x4d   : > { %1118 = vmatprep.subr.bf16.mxu1 %v1749_v13  ;;  %v1769_v26 = vld [vmem:[%s2201_s20 + $0x120] ss:$8 sps:$4 sm:$0xff]   ;;  %v1773_v28 = vld [vmem:[%s2201_s20 + $0x114] ss:$8 sps:$4 sm:$0xff]   ;;  %v1772_v29 = vld [vmem:[%s2201_s20 + $0x10] ss:$8 sps:$4 sm:$0xff]  }
  0x4e   : > { %1076 = vmatpush1.bf16.msra.mxu0 %v1748_v12  ;;  %v1775_v30 = vld [vmem:[%s2201_s20 + $0x110] ss:$8 sps:$4 sm:$0xff]   ;;  %v1776_v31 = vld [vmem:[%s2201_s20 + $0x4] ss:$8 sps:$4 sm:$0xff]   ;;  %v1778_v33 = vld [vmem:[%s2201_s20] ss:$8 sps:$4 sm:$0xff]  }
  0x4f   : > { %1077 = vmatprep.subr.bf16.mxu0 %v1752_v15  ;;  %v1779_v32 = vld [vmem:[%s2201_s20 + $0x104] ss:$8 sps:$4 sm:$0xff]   ;;  %v1781_v34 = vld [vmem:[%s2201_s20 + $0x100] ss:$8 sps:$4 sm:$0xff]   ;;  %v1782_v35 = vld [vmem:[%s2201_s20 + $0xf4] ss:$8 sps:$4 sm:$0xff]  }
  0x50   : > { %1119 = vmatpush1.bf16.msra.mxu1 %v1751_v14  ;;  %v1785_v36 = vld [vmem:[%s2201_s20 + $0x1f4] ss:$8 sps:$4 sm:$0xff]   ;;  %v1784_v37 = vld [vmem:[%s2201_s20 + $0xf0] ss:$8 sps:$4 sm:$0xff]   ;;  %v1788_v39 = vld [vmem:[%s2201_s20 + $0xe4] ss:$8 sps:$4 sm:$0xff]  }
  0x51   : > { %1120 = vmatprep.subr.bf16.mxu1 %v1755_v16  ;;  %v1787_v38 = vld [vmem:[%s2201_s20 + $0x1f0] ss:$8 sps:$4 sm:$0xff]   ;;  %v1791_v40 = vld [vmem:[%s2201_s20 + $0x1e4] ss:$8 sps:$4 sm:$0xff]   ;;  %v1790_v41 = vld [vmem:[%s2201_s20 + $0xe0] ss:$8 sps:$4 sm:$0xff]  }
  0x52   : > { %1078 = vmatpush1.bf16.msra.mxu0 %v1754_v17  ;;  %v1793_v42 = vld [vmem:[%s2201_s20 + $0x1e0] ss:$8 sps:$4 sm:$0xff]   ;;  %v1794_v43 = vld [vmem:[%s2201_s20 + $0xd4] ss:$8 sps:$4 sm:$0xff]   ;;  %v1796_v45 = vld [vmem:[%s2201_s20 + $0xd0] ss:$8 sps:$4 sm:$0xff]  }
  0x53   : > { %1079 = vmatprep.subr.bf16.mxu0 %v1758_v19  ;;  %v1797_v44 = vld [vmem:[%s2201_s20 + $0x1d4] ss:$8 sps:$4 sm:$0xff]   ;;  %v1799_v46 = vld [vmem:[%s2201_s20 + $0x1d0] ss:$8 sps:$4 sm:$0xff]   ;;  %v1800_v47 = vld [vmem:[%s2201_s20 + $0xc4] ss:$8 sps:$4 sm:$0xff]  }
  0x54   : > { %1121 = vmatpush1.bf16.msra.mxu1 %v1757_v18  ;;  %v1803_v48 = vld [vmem:[%s2201_s20 + $0x1c4] ss:$8 sps:$4 sm:$0xff]   ;;  %v1802_v49 = vld [vmem:[%s2201_s20 + $0xc0] ss:$8 sps:$4 sm:$0xff]   ;;  %v1806_v52 = vld [vmem:[%s2201_s20 + $0xb4] ss:$8 sps:$4 sm:$0xff]  }
  0x55   : > { %1122 = vmatprep.subr.bf16.mxu1 %v1761_v20  ;;  %v1831_v50 = vld [vmem:[%s2193_s16 + $0x4] ss:$24 sps:$4 sm:$0xff]   ;;  %v1805_v51 = vld [vmem:[%s2201_s20 + $0x1c0] ss:$8 sps:$4 sm:$0xff]   ;;  %v1808_v55 = vld [vmem:[%s2201_s20 + $0xb0] ss:$8 sps:$4 sm:$0xff]  }
  0x56   : > { %1080 = vmatpush1.bf16.msra.mxu0 %v1760_v21  ;;  %v1809_v53 = vld [vmem:[%s2201_s20 + $0x1b4] ss:$8 sps:$4 sm:$0xff]   ;;  %1103 = vmatprep.mubr.bf16.mxu0 %v1831_v50  ;;  %v1811_v56 = vld [vmem:[%s2201_s20 + $0x1b0] ss:$8 sps:$4 sm:$0xff]   ;;  %v1812_v57 = vld [vmem:[%s2201_s20 + $0xa4] ss:$8 sps:$4 sm:$0xff]  }
  0x57   : > { %1081 = vmatprep.subr.bf16.mxu0 %v1764_v23  ;;  %v1838_v54 = vld [vmem:[%s2193_s16 + $0xc] ss:$24 sps:$4 sm:$0xff]   ;;  %v1814_v59 = vld [vmem:[%s2201_s20 + $0xa0] ss:$8 sps:$4 sm:$0xff]   ;;  %v1820_v63 = vld [vmem:[%s2201_s20 + $0x90] ss:$8 sps:$4 sm:$0xff]  }
  0x58   : > { %1123 = vmatpush1.bf16.msra.mxu1 %v1763_v22  ;;  %v1815_v58 = vld [vmem:[%s2201_s20 + $0x1a4] ss:$8 sps:$4 sm:$0xff]   ;;  %1146 = vmatprep.mubr.bf16.mxu1 %v1838_v54  ;;  %v1817_v60 = vld [vmem:[%s2201_s20 + $0x1a0] ss:$8 sps:$4 sm:$0xff]   ;;  %v1818_v61 = vld [vmem:[%s2201_s20 + $0x94] ss:$8 sps:$4 sm:$0xff]  }
  0x59   : > { %1124 = vmatprep.subr.bf16.mxu1 %v1767_v24  ;;  %v1821_v62 = vld [vmem:[%s2201_s20 + $0x194] ss:$8 sps:$4 sm:$0xff]   ;;  %s2277_s11 = scalar_select %p430_p8, %s2022_s27, 1  ;;  %v1823_v1 = vld [vmem:[%s2201_s20 + $0x190] ss:$8 sps:$4 sm:$0xff]   ;;  %vm1247_vm3 = vcmask 80896  }
  0x5a   : > { %1082 = vmatpush1.bf16.msra.mxu0 %v1766_v25  ;;  %v1824_v2 = vld [vmem:[%s2201_s20 + $0x84] ss:$8 sps:$4 sm:$0xff]   ;;  %v1826_v4 = vld [vmem:[%s2201_s20 + $0x80] ss:$8 sps:$4 sm:$0xff]   ;;  %v1835_v6 = vld [vmem:[%s2201_s20 + $0x274] ss:$8 sps:$4 sm:$0xff]  }
  0x5b   : > { %1083 = vmatprep.subr.bf16.mxu0 %v1770_v27  ;;  %v1827_v3 = vld [vmem:[%s2201_s20 + $0x184] ss:$8 sps:$4 sm:$0xff]   ;;  %s1653_s21 = sshll.u32 %s2277_s11, 4  ;;  %v1832_v5 = vld [vmem:[%s2201_s20 + $0x180] ss:$8 sps:$4 sm:$0xff]   ;;  %s1537_s18 = sshll.u32 %s2277_s11, 1 }
  0x5c   : > { %1125 = vmatpush1.bf16.msra.mxu1 %v1769_v26  ;;  %v1829_v7 = vld [vmem:[%s2193_s16] ss:$24 sps:$4 sm:$0xff]   ;;  %s445_s10 = scalar_lea.vmem %s2389_s6, %s1653_s21  ;;  %v1841_v10 = vld [vmem:[%s2201_s20 + $0x264] ss:$8 sps:$4 sm:$0xff]   ;;  %v1844_v14 = vld [vmem:[%s2201_s20 + $0x254] ss:$8 sps:$4 sm:$0xff]   ;;  %s433_s22 = scalar_lea.vmem %s2386_s3, %s1537_s18 }
  0x5d   : > { %1126 = vmatprep.subr.bf16.mxu1 %v1773_v28  ;;  %v1833_v8 = vld [vmem:[%s2201_s20 + $0x270] ss:$8 sps:$4 sm:$0xff]   ;;  %v1881_v11 = vld [vmem:[%s445_s10 + $0x4] ss:$8 sps:$4 sm:$0x1f]   ;;  %s437_s15 = scalar_lea.vmem %s2387_s4, %s1537_s18  ;;  %s440_s30 = scalar_lea.vmem %s2388_s5, %s2277_s11  ;;  %vm1352_vm4 = vcmask 122880  }
  0x5e   : > { %1084 = vmatpush1.bf16.msra.mxu0 %v1772_v29  ;;  %v1836_v9 = vld [vmem:[%s2193_s16 + $0x8] ss:$24 sps:$4 sm:$0xff]   ;;  %v1889_v15 = vld [vmem:[%s2193_s16 + $0x14] ss:$24 sps:$4 sm:$0xff]   ;;  %s1650_s13 = sshll.u32 %s2022_s27, 4  ;;  %s422_s12 = scalar_lea.vmem [#allocation7], %s2189_s17 }
  0x5f   : > { %1085 = vmatprep.subr.bf16.mxu0 %v1776_v31  ;;  %v1839_v12 = vld [vmem:[%s2201_s20 + $0x260] ss:$8 sps:$4 sm:$0xff]   ;;  %v1842_v17 = vld [vmem:[%s2201_s20 + $0x250] ss:$8 sps:$4 sm:$0xff]   ;;  %v1847_v18 = vld [vmem:[%s2201_s20 + $0x244] ss:$8 sps:$4 sm:$0xff]  }
  0x60   : > { %1127 = vmatpush1.bf16.msra.mxu1 %v1775_v30  ;;  %v1886_v13 = vld [vmem:[%s445_s10] ss:$8 sps:$4 sm:$0x1f]   ;;  %v1850_v20 = vld [vmem:[%s2201_s20 + $0x234] ss:$8 sps:$4 sm:$0xff]   ;;  %s1368_s21 = sshll.u32 %s422_s12, 4  ;;  %s2341_s10 = scalar_lea.hbm %s2390_s7, %s1650_s13  ;;  %s1369_s21 = int_to_ptr.vmem [resolvable:$true] %s1368_s21 }
  0x61   : > { %1128 = vmatprep.subr.bf16.mxu1 %v1779_v32  ;;  %v1253_v16 = vsel %vm1251_vm0, %v1886_v13, 0  ;;  %v1845_v19 = vld [vmem:[%s2201_s20 + $0x240] ss:$8 sps:$4 sm:$0xff]   ;;  %v1848_v21 = vld [vmem:[%s2201_s20 + $0x230] ss:$8 sps:$4 sm:$0xff]   ;;  %s1355_s11 = scalar_lea.sflag [#allocation4], %s2189_s17 }
  0x62   : > { %1086 = vmatpush1.bf16.msra.mxu0 %v1778_v33  ;;  %v1851_v22 = vld [vmem:[%s2201_s20 + $0x220] ss:$8 sps:$4 sm:$0xff]   ;;  %v1856_v23 = vld [vmem:[%s2201_s20 + $0x214] ss:$8 sps:$4 sm:$0xff]   ;;  %v1854_v24 = vld [vmem:[%s2201_s20 + $0x210] ss:$8 sps:$4 sm:$0xff]  }
  0x63   : > { %1087 = vmatprep.subr.bf16.mxu0 %v1782_v35  ;;  %v1859_v25 = vld [vmem:[%s2201_s20 + $0x204] ss:$8 sps:$4 sm:$0xff]   ;;  %v1857_v26 = vld [vmem:[%s2201_s20 + $0x200] ss:$8 sps:$4 sm:$0xff]   ;;  %v1862_v27 = vld [vmem:[%s2201_s20 + $0x2f4] ss:$8 sps:$4 sm:$0xff]  }
  0x64   : > { %1129 = vmatpush1.bf16.msra.mxu1 %v1781_v34  ;;  %v1860_v28 = vld [vmem:[%s2201_s20 + $0x2f0] ss:$8 sps:$4 sm:$0xff]   ;;  %v1865_v29 = vld [vmem:[%s2201_s20 + $0x2e4] ss:$8 sps:$4 sm:$0xff]   ;;  %v1863_v30 = vld [vmem:[%s2201_s20 + $0x2e0] ss:$8 sps:$4 sm:$0xff]  }
  0x65   : > { %1130 = vmatprep.subr.bf16.mxu1 %v1785_v36  ;;  %v1868_v31 = vld [vmem:[%s2201_s20 + $0x2d4] ss:$8 sps:$4 sm:$0xff]   ;;  %v1866_v32 = vld [vmem:[%s2201_s20 + $0x2d0] ss:$8 sps:$4 sm:$0xff]   ;;  %v1871_v33 = vld [vmem:[%s2201_s20 + $0x2c4] ss:$8 sps:$4 sm:$0xff]  }
  0x66   : > { %1088 = vmatpush2.bf16.msra.mxu0 %v1784_v37  ;;  %v1869_v34 = vld [vmem:[%s2201_s20 + $0x2c0] ss:$8 sps:$4 sm:$0xff]   ;;  %v1874_v35 = vld [vmem:[%s2201_s20 + $0x2b4] ss:$8 sps:$4 sm:$0xff]   ;;  %v1872_v36 = vld [vmem:[%s2201_s20 + $0x2b0] ss:$8 sps:$4 sm:$0xff]  }
  0x67   : > { %1089 = vmatprep.subr.bf16.mxu0 %v1788_v39  ;;  %v1877_v37 = vld [vmem:[%s2201_s20 + $0x2a4] ss:$8 sps:$4 sm:$0xff]   ;;  %v1880_v39 = vld [vmem:[%s2201_s20 + $0x294] ss:$8 sps:$4 sm:$0xff]   ;;  %s1946_s18 = scalar_lea.vmem %s1369_s21, 16  ;;  %s2040_s1 = smov [#allocation7]  }
  0x68   : > { %1131 = vmatpush2.bf16.msra.mxu1 %v1787_v38  ;;  %v1875_v38 = vld [vmem:[%s2201_s20 + $0x2a0] ss:$8 sps:$4 sm:$0xff]   ;;  %p1947_p0 = scmp.ne.s32.totalorder %s1369_s21, %s1946_s18  ;;  %s1950_s19 = sshll.u32 %s2040_s1, 4  ;;  %s1951_s19 = int_to_ptr.vmem [resolvable:$false] %s1950_s19 }
  0x69   : > { %1132 = vmatprep.subr.bf16.mxu1 %v1791_v40  ;;  %v551_v40 = vlaneseq  ;;  %s1952_s27 = scalar_lea.vmem %s1951_s19, 32  ;;  %p1953_p5 = scmp.lt.s32.totalorder %s1369_s21, %s1951_s19 }
  0x6a   : > { %1090 = vmatpush2.bf16.msra.mxu0 %v1790_v41  ;;  %v1878_v41 = vld [vmem:[%s2201_s20 + $0x290] ss:$8 sps:$4 sm:$0xff]   ;;  %p1948_p2 = pnand %p1947_p0, %p2132_p9  ;;  %p1954_p6 = scmp.lt.s32.totalorder %s1952_s27, %s1946_s18 }
  0x6b   : > { %1091 = vmatprep.subr.bf16.mxu0 %v1794_v43  ;;  %v1211_v43 = vand.u32 127, %v551_v40 }
  0x6c   : > { %1133 = vmatpush2.bf16.msra.mxu1 %v1793_v42  ;;  %v1885_v42 = vld [vmem:[%s2201_s20 + $0x284] ss:$8 sps:$4 sm:$0xff]   ;;  %p1949_p4 = pneg %p1948_p2  ;;  %p1955_p7 = por %p1954_p6, %p1953_p5 }
  0x6d   : > { %1134 = vmatprep.subr.bf16.mxu1 %v1797_v44 }
  0x6e   : > { %1092 = vmatpush2.bf16.msra.mxu0 %v1796_v45  ;;  %v1883_v45 = vld [vmem:[%s2201_s20 + $0x280] ss:$8 sps:$4 sm:$0xff]   ;;  %p1956_p1 = pnand %p1955_p7, %p1949_p4 }
  0x6f   : > { %1093 = vmatprep.subr.bf16.mxu0 %v1800_v47 }
  0x70   : > { %1135 = vmatpush2.bf16.msra.mxu1 %v1799_v46  ;;  %v1887_v46 = vld [vmem:[%s2193_s16 + $0x10] ss:$24 sps:$4 sm:$0xff]  }
  0x71   : > { %1136 = vmatprep.subr.bf16.mxu1 %v1803_v48  ;;  %v2039_v48 = vmov 0.0  }
  0x72   : > { %1094 = vmatpush2.bf16.msra.mxu0 %v1802_v49 }
  0x73   : > { %1095 = vmatprep.subr.bf16.mxu0 %v1806_v52  ;;  %v552_v52 = vshrl.u32 %v551_v40, 7 }
  0x74   : > { %1137 = vmatpush2.bf16.msra.mxu1 %v1805_v51 }
  0x75   : > { %1138 = vmatprep.subr.bf16.mxu1 %v1809_v53  ;;  %v553_v54 = vsub.s32 0, %v552_v52 }
  0x76   : > { %1096 = vmatpush2.bf16.msra.mxu0 %v1808_v55  ;;  %v549_v55 = vld [vmem:[%s433_s22] sm:$0x3] }
  0x77   : > { %1097 = vmatprep.subr.bf16.mxu0 %v1812_v57  ;;  %v557_v57 = vsub.s32 1, %v552_v52 }
  0x78   : > { %1139 = vmatpush2.bf16.msra.mxu1 %v1811_v56 }
  0x79   : > { %1140 = vmatprep.subr.bf16.mxu1 %v1815_v58 }
  0x7a   : > { %1098 = vmatpush2.bf16.msra.mxu0 %v1814_v59  ;;  %v554_v59 = vrot.slane %v549_v55, %v553_v54 }
  0x7b   : > { %1099 = vmatprep.subr.bf16.mxu0 %v1818_v61  ;;  %v558_v61 = vrot.slane %v549_v55, %v557_v57 }
  0x7c   : > { %1141 = vmatpush2.bf16.msra.mxu1 %v1817_v60 }
  0x7d   : > { %1142 = vmatprep.subr.bf16.mxu1 %v1821_v62 }
  0x7e   : > { %1100 = vmatpush2.bf16.msra.mxu0 %v1820_v63 }
  0x7f   : > { %1101 = vmatprep.subr.bf16.mxu0 %v1824_v2 }
  0x80   : > { %1143 = vmatpush2.bf16.msra.mxu1 %v1823_v1 }
  0x81   : > { %1144 = vmatprep.subr.bf16.mxu1 %v1827_v3 }
  0x82   : > { %1102 = vmatpush2.bf16.msra.mxu0 %v1826_v4  ;;  %v1227_v4 = vld [vmem:[%s437_s15] sm:$0x3] }
  0x83   : > { %1157 = vmatprep.subr.bf16.mxu0 %v1835_v6  ;;  %v1236_v13 = vrot.slane %v1227_v4, %v557_v57 }
  0x84   : > { %1145 = vmatpush2.bf16.msra.mxu1 %v1832_v5 }
  0x85   : > { %1104 = vmatmul.mubr.bf16.vlgmr.msra.gmra.mxu0 %v1829_v7  ;;  %1647 = vmatprep.subr.msk.bf16.mxu1 %vm1251_vm0, %v1881_v11 }
  0x86   : > { %1158 = vmatpush1.bf16.msra.mxu0 %v1833_v8  ;;  %1189 = vmatprep.mubr.bf16.mxu0 %v1889_v15 }
  0x87   : > { %1147 = vmatmul.mubr.bf16.vlgmr.msra.gmra.mxu1 %v1836_v9  ;;  %1159 = vmatprep.subr.bf16.mxu0 %v1841_v10  ;;  %v1232_v10 = vrot.slane %v1227_v4, %v553_v54 }
  0x88   : > { %1290 = vmatprep.mubr.bf16.mxu1 %v2038_v0  ;;  %1273 = vmatpush1.bf16.msra.mxu1 %v1253_v16  ;;  %v1853_v0 = vld [vmem:[%s2201_s20 + $0x224] ss:$8 sps:$4 sm:$0xff]  }
  0x8a   : > { %1160 = vmatpush1.bf16.msra.mxu0 %v1839_v12 }
  0x8b   : > { %1161 = vmatprep.subr.bf16.mxu0 %v1844_v14 }
  0x8e   : > { %1162 = vmatpush1.bf16.msra.mxu0 %v1842_v17 }
  0x8f   : > { %1163 = vmatprep.subr.bf16.mxu0 %v1847_v18 }
  0x92   : > { %1164 = vmatpush1.bf16.msra.mxu0 %v1845_v19 }
  0x93   : > { %1165 = vmatprep.subr.bf16.mxu0 %v1850_v20 }
  0x96   : > { %1166 = vmatpush1.bf16.msra.mxu0 %v1848_v21 }
  0x97   : > { %1167 = vmatprep.subr.bf16.mxu0 %v1853_v0 }
  0x9a   : > { %1168 = vmatpush1.bf16.msra.mxu0 %v1851_v22 }
  0x9b   : > { %1169 = vmatprep.subr.bf16.mxu0 %v1856_v23 }
  0x9e   : > { %1170 = vmatpush1.bf16.msra.mxu0 %v1854_v24 }
  0x9f   : > { %1171 = vmatprep.subr.bf16.mxu0 %v1859_v25 }
  0xa2   : > { %1172 = vmatpush1.bf16.msra.mxu0 %v1857_v26 }
  0xa3   : > { %1173 = vmatprep.subr.bf16.mxu0 %v1862_v27 }
  0xa6   : > { %1174 = vmatpush2.bf16.msra.mxu0 %v1860_v28 }
  0xa7   : > { %1175 = vmatprep.subr.bf16.mxu0 %v1865_v29 }
  0xaa   : > { %1176 = vmatpush2.bf16.msra.mxu0 %v1863_v30 }
  0xab   : > { %1177 = vmatprep.subr.bf16.mxu0 %v1868_v31 }
  0xae   : > { %1178 = vmatpush2.bf16.msra.mxu0 %v1866_v32 }
  0xaf   : > { %1179 = vmatprep.subr.bf16.mxu0 %v1871_v33 }
  0xb2   : > { %1180 = vmatpush2.bf16.msra.mxu0 %v1869_v34 }
  0xb3   : > { %1181 = vmatprep.subr.bf16.mxu0 %v1874_v35 }
  0xb6   : > { %1182 = vmatpush2.bf16.msra.mxu0 %v1872_v36 }
  0xb7   : > { %1183 = vmatprep.subr.bf16.mxu0 %v1877_v37 }
  0xba   : > { %1184 = vmatpush2.bf16.msra.mxu0 %v1875_v38 }
  0xbb   : > { %1185 = vmatprep.subr.bf16.mxu0 %v1880_v39 }
  0xbe   : > { %1186 = vmatpush2.bf16.msra.mxu0 %v1878_v41 }
  0xbf   : > { %1187 = vmatprep.subr.bf16.mxu0 %v1885_v42 }
  0xc1   : > { %v1214_v44 = vpop.permute.xlu0 %1213 }
  0xc2   : > { %vm1218_vm1 = vcmp.eq.s32.totalorder %v1214_v44, %v1211_v43  ;;  %1188 = vmatpush2.bf16.msra.mxu0 %v1883_v45 }
  0xc3   : > { %v1643_v49 = vsel %vm1218_vm1, 1.0, %v2039_v48 }
  0xc5   : > { %v1217_v47 = vpop.permute.xlu0 %1216  ;;  %1190 = vmatmul.mubr.bf16.vlgmr.msra.gmra.mxu0 %v1887_v46 }
  0xc6   : > { %vm1219_vm2 = vcmp.eq.s32.totalorder %v1217_v47, %v1211_v43  ;;  %v1649_v43 = vld [vmem:[%s440_s30] ss:$0 sm:$0xff] }
  0xc7   : > { %v1644_v50 = vsel %vm1219_vm2, 1.0, %v2039_v48 }
  0xc8   : > { %v1224_v51 = vpack.c.bf16 %v1644_v50, %v1643_v49 }
  0xca   : > { %1648 = vmatmul.mubr.msk.bf16.vlgmr.msra.gmra.mxu1 %vm1247_vm3, %v1224_v51 }
 0x145   : > { %v1105_v53 = vpop.f32.mrf.mxu0 }
 0x146   : > { %v1106_v63 = vadd.f32 %v1105_v53, %v554_v59 }
 0x147   : > { %v1148_v56 = vpop.f32.mrf.mxu1  ;;  %v1107_v58 = vpop.f32.mrf.mxu0 }
 0x148   : > { %v1108_v2 = vadd.f32 %v1107_v58, %v558_v61  ;;  %v1149_v5 = vadd.f32 %v1148_v56, %v1106_v63 }
 0x149   : > { %v1150_v60 = vpop.f32.mrf.mxu1  ;;  %v1109_v62 = vpop.f32.mrf.mxu0 }
 0x14a   : > { %v1110_v6 = vadd.f32 %v1109_v62, %v554_v59  ;;  %v1151_v11 = vadd.f32 %v1150_v60, %v1108_v2 }
 0x14b   : > { %v1152_v1 = vpop.f32.mrf.mxu1  ;;  %v1111_v3 = vpop.f32.mrf.mxu0 }
 0x14c   : > { %v1112_v7 = vadd.f32 %v1111_v3, %v558_v61  ;;  %v1153_v16 = vadd.f32 %v1152_v1, %v1110_v6 }
 0x14d   : > { %v1154_v8 = vpop.f32.mrf.mxu1 }
 0x14e   : > { %v1155_v19 = vadd.f32 %v1154_v8, %v1112_v7 }
 0x185   : > { %v1191_v9 = vpop.f32.mrf.mxu0 }
 0x186   : > { %v1192_v12 = vadd.f32 %v1191_v9, %v1149_v5 }
 0x187   : > { %v1193_v14 = vpop.f32.mrf.mxu0 }
 0x188   : > { %v1200_v17 = vmul.f32 0.2, %v1192_v12  ;;  %v1194_v18 = vadd.f32 %v1193_v14, %v1151_v11 }
 0x189   : > { %v1195_v21 = vpop.f32.mrf.mxu0 }
 0x18a   : > { %v1292_v15 = vpop.f32.mrf.mxu1  ;;  %v1204_v22 = vmax.f32 %v1192_v12, %v1200_v17  ;;  %v1201_v23 = vmul.f32 0.2, %v1194_v18  ;;  %v1196_v24 = vadd.f32 %v1195_v21, %v1153_v16 }
 0x18b   : > { %v1293_v20 = vadd.f32 %v1292_v15, %v1232_v10  ;;  %v1197_v26 = vpop.f32.mrf.mxu0 }
 0x18c   : > { %v1294_v0 = vpop.f32.mrf.mxu1  ;;  %v1205_v28 = vmax.f32 %v1194_v18, %v1201_v23  ;;  %v1202_v29 = vmul.f32 0.2, %v1196_v24  ;;  %v1198_v30 = vadd.f32 %v1197_v26, %v1155_v19 }
 0x18d   : > { %v1295_v25 = vadd.f32 %v1294_v0, %v1236_v13  ;;  %v1301_v33 = vmul.f32 %v1293_v20, %v1204_v22 }
 0x18e   : > { %v1296_v27 = vpop.f32.mrf.mxu1  ;;  %v1206_v34 = vmax.f32 %v1196_v24, %v1202_v29  ;;  %v1203_v35 = vmul.f32 0.2, %v1198_v30 }
 0x18f   : > { %v1297_v31 = vadd.f32 %v1296_v27, %v1232_v10  ;;  %v1302_v37 = vmul.f32 %v1295_v25, %v1205_v28 }
 0x190   : > { %v1298_v32 = vpop.f32.mrf.mxu1  ;;  %v1207_v38 = vmax.f32 %v1198_v30, %v1203_v35 }
 0x191   : > { %v1299_v36 = vadd.f32 %v1298_v32, %v1236_v13  ;;  %v1305_v39 = vadd.f32 %v1302_v37, %v1301_v33  ;;  %v1303_v40 = vmul.f32 %v1297_v31, %v1206_v34 }
 0x193   : > { %v1304_v41 = vmul.f32 %v1299_v36, %v1207_v38  ;;  %1306 = vadd.xlane.f32.xlu1 %v1305_v39 }
 0x195   : > { %v1308_v42 = vadd.f32 %v1304_v41, %v1303_v40 }
 0x197   : > { %1309 = vadd.xlane.f32.xlu1 %v1308_v42 }
 0x21c   : > { %v1307_v44 = vpop.xlane.xlu1 %1306 }
 0x21d   : > { %v1318_v45 = vadd.f32 %v1649_v43, %v1307_v44 }
 0x21f   : > { %1320 = vxpose.xlu0.b32.start [1/2] (short) (narrow) %v1318_v45, 8 }
 0x220   : > { %v1310_v46 = vpop.xlane.xlu1 %1309 }
 0x221   : > { %v1319_v47 = vadd.f32 %v1649_v43, %v1310_v46 }
 0x223   : > { %1321 = vxpose.xlu0.b32.end [2/2] (short) (narrow) %v1319_v47, 8 }
 0x29b   : > { %v1336_v48 = vpop.trf.xlu0 }
 0x29c   : > { %1353 = vst.msk [vmem:[%s422_s12] sm:$0x1] %vm1352_vm4, %v1336_v48 }
 0x29d   : > { %1959 = shalt.err (!%p1956_p1)
}
 0x29e   : > { %s1960_s22 = scalar_lea.hbm %s2341_s10, 16  ;;  %s1964_s26 = scalar_lea.hbm %s2390_s7, 32 }
 0x29f   : > { %p1961_p10 = scmp.ne.s32.totalorder %s2341_s10, %s1960_s22  ;;  %p1965_p8 = scmp.lt.s32.totalorder %s2341_s10, %s2390_s7 }
 0x2a0   : > { %p1966_p0 = scmp.lt.s32.totalorder %s1964_s26, %s1960_s22 }
 0x2a1   : > { %p1962_p13 = pnand %p1961_p10, %p2132_p9 }
 0x2a2   : > { %p1967_p2 = por %p1966_p0, %p1965_p8 }
 0x2a3   : > { %p1963_p3 = pneg %p1962_p13 }
 0x2a5   : > { %p1968_p4 = pnand %p1967_p2, %p1963_p3 }
 0x2a7   : > { %1971 = shalt.err (!%p1968_p4)
}
 0x2a8   : > { %1664 = dma.vmem_to_hbm [thread:$0]  (%p2132_p9), %s1369_s21, 16, %s2341_s10, %s1355_s11  }
 0x2a9 PF: > { %s1380_s30 = sand.u32 1, %s2010_s24   ;;  %p1674_p5 = pnand %p1533_p12, %p2139_p11 }
 0x2aa   : > { %s1381_s13 = scalar_lea.sflag [#allocation4], %s1380_s30 }
 0x2ab   : > { %p1675_p6 = pneg %p1674_p5 }
 0x2ad   : > { %2005 = dma.done.wait (%p1675_p6), %s1381_s13, 16  }
 0x2ae   : > { %2007 = vsyncadd (%p1675_p6), %s1381_s13, 4294967280  ;;  %s26_s29 = sadd.s32 1, %s2030_s29   ;;  %s2407_s12 = sld [smem:[#allocation11_spill]] }
 0x2af   : > { %p23_p7 = scmp.ge.s32.totalorder %s26_s29, 4   ;;  %s2408_s26 = sld [smem:[#allocation13_spill]] }
 0x2b0   : > { %s2409_s14 = sld [smem:[#allocation12_spill]]  ;;  %s2410_s24 = smov %s2014_s25 }
 0x2b1   : > { %s2412_s27 = smov %s2026_s28 }
 0x2b2   :  { %25 = sbr.rel (!%p23_p7) target bundleno = 10 (0xa), region = 121 }
 0x2b4   : > { %s2411_s25 = smov %s2407_s12 }
 0x2b6   : > { %s2413_s28 = smov %s2409_s14 }
 0x2b7   :  { %1385 = vsyncpa [#allocation3], 1 }
 0x2b8   :  { %1387 = vsyncpa [#allocation3 + $0x1], 1 }
 0x2b9   :  { %1388 = vsyncpa [#allocation6], 1 }
 0x2ba   :  { %1390 = vsyncpa [#allocation6 + $0x1], 1 }
 0x2bb   :  { %1391 = vsyncpa [#allocation4], 1 }
 0x2bc   :  { %1393 = vsyncpa [#allocation4 + $0x1], 1 }

</bundles_post_ra>
